<compile_context>
chip_gen: v5e
topology: v5e:2x2
jax: 0.10.0
libtpu: 0.0.40
codegen_flags: <defaults>
</compile_context>

<pallas_src>
import functools

import jax
import jax.numpy as jnp
from jax.experimental import pallas as pl
from jax.experimental.pallas import tpu as pltpu


def _img_proj_kernel(x_ref, w_ref, b_ref, g_ref, beta_ref, o_ref, *, T, D):
    # x_ref:    (B, E)     full embeddings
    # w_ref:    (E, T*D)   full projection weight (pre-transposed)
    # b_ref:    (1, T*D)   projection bias
    # g_ref:    (1, D)     LayerNorm gamma
    # beta_ref: (1, D)     LayerNorm beta
    # o_ref:    (B, T*D)   lane-dense output slab
    eps = 1e-5  # PyTorch nn.LayerNorm default

    # Single fused matmul over all T tokens; f32 accumulate on the MXU.
    y = jnp.dot(x_ref[...], w_ref[...], preferred_element_type=jnp.float32)
    y = y + b_ref[...]  # (B, T*D) + (1, T*D) broadcast

    g = g_ref[...]       # (1, D)
    bta = beta_ref[...]  # (1, D)

    # Statically unrolled LayerNorm over each D-wide token slice (T is small).
    # One-pass variance (E[y^2] - mean^2) halves the cross-lane reductions.
    outs = []
    for t in range(T):
        yt = y[:, t * D:(t + 1) * D]                       # (B, D), lane-aligned slice
        mean = jnp.mean(yt, axis=-1, keepdims=True)        # (B, 1)
        mean_sq = jnp.mean(yt * yt, axis=-1, keepdims=True)
        var = mean_sq - mean * mean
        normed = (yt - mean) * jax.lax.rsqrt(var + eps)
        outs.append(normed * g + bta)

    # One wide, lane-dense store of the whole (B, T*D) slab.
    o_ref[...] = jnp.concatenate(outs, axis=-1).astype(o_ref.dtype)


def image_proj_model(image_embeds, weight_t, bias, gamma, beta,
                     clip_extra_context_tokens, cross_attention_dim):
    """image_embeds: (B, E); weight_t: (E, T*D); bias: (T*D,); gamma/beta: (D,)."""
    B, E = image_embeds.shape
    T = clip_extra_context_tokens
    D = cross_attention_dim
    assert weight_t.shape == (E, T * D)

    bias_2d = bias.reshape(1, T * D)
    gamma_2d = gamma.reshape(1, D)
    beta_2d = beta.reshape(1, D)

    kernel = functools.partial(_img_proj_kernel, T=T, D=D)

    out_flat = pl.pallas_call(
        kernel,
        out_shape=jax.ShapeDtypeStruct((B, T * D), image_embeds.dtype),
        grid_spec=pltpu.PrefetchScalarGridSpec(
            num_scalar_prefetch=0,
            grid=(1,),  # single fused step: all fixed per-step overhead paid once
            in_specs=[
                pl.BlockSpec((B, E), lambda i: (0, 0)),        # x
                pl.BlockSpec((E, T * D), lambda i: (0, 0)),    # full weight (one DMA)
                pl.BlockSpec((1, T * D), lambda i: (0, 0)),    # bias
                pl.BlockSpec((1, D), lambda i: (0, 0)),        # gamma
                pl.BlockSpec((1, D), lambda i: (0, 0)),        # beta
            ],
            out_specs=pl.BlockSpec((B, T * D), lambda i: (0, 0)),  # lane-dense slab
        ),
        compiler_params=pltpu.CompilerParams(
            dimension_semantics=("arbitrary",),
        ),
    )(image_embeds, weight_t, bias_2d, gamma_2d, beta_2d)

    return out_flat.reshape(B, T, D)


def _reference(image_embeds, weight_t, bias, gamma, beta, T, D):
    y = image_embeds @ weight_t + bias           # (B, T*D)
    y = y.reshape(-1, T, D)
    mean = jnp.mean(y, axis=-1, keepdims=True)
    var = jnp.mean((y - mean) ** 2, axis=-1, keepdims=True)
    return (y - mean) / jnp.sqrt(var + 1e-5) * gamma + beta


if __name__ == "__main__":
    # Small, consistent shapes:
    #   batch B=2, clip_embeddings_dim E=128,
    #   cross_attention_dim D=256, clip_extra_context_tokens T=4
    B, E, D, T = 2, 128, 256, 4

    key = jax.random.PRNGKey(0)
    k_x, k_w, k_b = jax.random.split(key, 3)

    image_embeds = jax.random.normal(k_x, (B, E), dtype=jnp.float32)

    # Deterministic Linear init (PyTorch-style uniform(-bound, bound)), stored
    # pre-transposed as (E, T*D) so the kernel computes x @ W_t directly.
    bound = 1.0 / jnp.sqrt(float(E))
    weight_t = jax.random.uniform(k_w, (E, T * D), dtype=jnp.float32,
                                  minval=-bound, maxval=bound)
    bias = jax.random.uniform(k_b, (T * D,), dtype=jnp.float32,
                              minval=-bound, maxval=bound)

    # LayerNorm defaults (elementwise_affine=True): gamma=1, beta=0.
    gamma = jnp.ones((D,), dtype=jnp.float32)
    beta = jnp.zeros((D,), dtype=jnp.float32)

    out = image_proj_model(image_embeds, weight_t, bias, gamma, beta,
                           clip_extra_context_tokens=T,
                           cross_attention_dim=D)
    out = jax.block_until_ready(out)

    ref = _reference(image_embeds, weight_t, bias, gamma, beta, T, D)
    assert out.shape == (B, T, D), out.shape
    assert jnp.allclose(out, ref, atol=1e-4, rtol=1e-4), "mismatch vs reference"

    print("KERNEL_OK")
</pallas_src>

<mosaic_0001>
module attributes {stable_mosaic.version = 11 : i64} {
  func.func @_img_proj_kernel(%arg0: i32, %arg1: memref<2x128xf32, #tpu.memory_space<vmem>>, %arg2: memref<128x1024xf32, #tpu.memory_space<vmem>>, %arg3: memref<1x1024xf32, #tpu.memory_space<vmem>>, %arg4: memref<1x256xf32, #tpu.memory_space<vmem>>, %arg5: memref<1x256xf32, #tpu.memory_space<vmem>>, %arg6: memref<2x1024xf32, #tpu.memory_space<vmem>>) attributes {dimension_semantics = [#tpu.dimension_semantics<arbitrary>], iteration_bounds = array<i64: 1>, scalar_prefetch = 0 : i64, scratch_operands = 0 : i64, tpu.core_type = #tpu.core_type<tc>, window_params = [{pipeline_mode = #tpu.pipeline_mode<synchronous>, transform_indices = @transform_0, window_bounds = array<i64: 2, 128>}, {pipeline_mode = #tpu.pipeline_mode<synchronous>, transform_indices = @transform_1, window_bounds = array<i64: 128, 1024>}, {pipeline_mode = #tpu.pipeline_mode<synchronous>, transform_indices = @transform_2, window_bounds = array<i64: 1, 1024>}, {pipeline_mode = #tpu.pipeline_mode<synchronous>, transform_indices = @transform_3, window_bounds = array<i64: 1, 256>}, {pipeline_mode = #tpu.pipeline_mode<synchronous>, transform_indices = @transform_4, window_bounds = array<i64: 1, 256>}, {pipeline_mode = #tpu.pipeline_mode<synchronous>, transform_indices = @transform_5, window_bounds = array<i64: 2, 1024>}]} {
    %c0 = arith.constant 0 : index
    %c0_0 = arith.constant 0 : index
    %0 = vector.load %arg1[%c0, %c0_0] : memref<2x128xf32, #tpu.memory_space<vmem>>, vector<2x128xf32>
    %c0_1 = arith.constant 0 : index
    %c0_2 = arith.constant 0 : index
    %1 = vector.load %arg2[%c0_1, %c0_2] : memref<128x1024xf32, #tpu.memory_space<vmem>>, vector<128x1024xf32>
    %cst = arith.constant dense<0.000000e+00> : vector<2x1024xf32>
    %2 = tpu.matmul %0, %1, %cst {dimension_numbers = #tpu.dot_dimension_numbers<[1], [0], [0], [1], [0, 0, 1, 1], [], []>} : vector<2x128xf32>, vector<128x1024xf32>, vector<2x1024xf32> -> vector<2x1024xf32>
    %c0_3 = arith.constant 0 : index
    %c0_4 = arith.constant 0 : index
    %3 = vector.load %arg3[%c0_3, %c0_4] : memref<1x1024xf32, #tpu.memory_space<vmem>>, vector<1x1024xf32>
    %4 = vector.broadcast %3 : vector<1x1024xf32> to vector<2x1024xf32>
    %5 = arith.addf %2, %4 : vector<2x1024xf32>
    %c0_5 = arith.constant 0 : index
    %c0_6 = arith.constant 0 : index
    %6 = vector.load %arg4[%c0_5, %c0_6] : memref<1x256xf32, #tpu.memory_space<vmem>>, vector<1x256xf32>
    %c0_7 = arith.constant 0 : index
    %c0_8 = arith.constant 0 : index
    %7 = vector.load %arg5[%c0_7, %c0_8] : memref<1x256xf32, #tpu.memory_space<vmem>>, vector<1x256xf32>
    %8 = vector.extract_strided_slice %5 {offsets = [0, 0], sizes = [2, 256], strides = [1, 1]} : vector<2x1024xf32> to vector<2x256xf32>
    %cst_9 = arith.constant dense<0.000000e+00> : vector<2xf32>
    %9 = vector.multi_reduction <add>, %8, %cst_9 [1] : vector<2x256xf32> to vector<2xf32>
    %10 = vector.shape_cast %9 : vector<2xf32> to vector<2x1xf32>
    %cst_10 = arith.constant 2.560000e+02 : f32
    %11 = vector.broadcast %cst_10 : f32 to vector<2x1xf32>
    %12 = arith.divf %10, %11 : vector<2x1xf32>
    %13 = arith.mulf %8, %8 : vector<2x256xf32>
    %cst_11 = arith.constant dense<0.000000e+00> : vector<2xf32>
    %14 = vector.multi_reduction <add>, %13, %cst_11 [1] : vector<2x256xf32> to vector<2xf32>
    %15 = vector.shape_cast %14 : vector<2xf32> to vector<2x1xf32>
    %cst_12 = arith.constant 2.560000e+02 : f32
    %16 = vector.broadcast %cst_12 : f32 to vector<2x1xf32>
    %17 = arith.divf %15, %16 : vector<2x1xf32>
    %18 = arith.mulf %12, %12 : vector<2x1xf32>
    %19 = arith.subf %17, %18 : vector<2x1xf32>
    %20 = vector.broadcast %12 : vector<2x1xf32> to vector<2x256xf32>
    %21 = arith.subf %8, %20 : vector<2x256xf32>
    %cst_13 = arith.constant 9.99999974E-6 : f32
    %22 = vector.broadcast %cst_13 : f32 to vector<2x1xf32>
    %23 = arith.addf %19, %22 : vector<2x1xf32>
    %24 = math.rsqrt %23 : vector<2x1xf32>
    %25 = vector.broadcast %24 : vector<2x1xf32> to vector<2x256xf32>
    %26 = arith.mulf %21, %25 : vector<2x256xf32>
    %27 = vector.broadcast %6 : vector<1x256xf32> to vector<2x256xf32>
    %28 = arith.mulf %26, %27 : vector<2x256xf32>
    %29 = vector.broadcast %7 : vector<1x256xf32> to vector<2x256xf32>
    %30 = arith.addf %28, %29 : vector<2x256xf32>
    %31 = vector.extract_strided_slice %5 {offsets = [0, 256], sizes = [2, 256], strides = [1, 1]} : vector<2x1024xf32> to vector<2x256xf32>
    %cst_14 = arith.constant dense<0.000000e+00> : vector<2xf32>
    %32 = vector.multi_reduction <add>, %31, %cst_14 [1] : vector<2x256xf32> to vector<2xf32>
    %33 = vector.shape_cast %32 : vector<2xf32> to vector<2x1xf32>
    %cst_15 = arith.constant 2.560000e+02 : f32
    %34 = vector.broadcast %cst_15 : f32 to vector<2x1xf32>
    %35 = arith.divf %33, %34 : vector<2x1xf32>
    %36 = arith.mulf %31, %31 : vector<2x256xf32>
    %cst_16 = arith.constant dense<0.000000e+00> : vector<2xf32>
    %37 = vector.multi_reduction <add>, %36, %cst_16 [1] : vector<2x256xf32> to vector<2xf32>
    %38 = vector.shape_cast %37 : vector<2xf32> to vector<2x1xf32>
    %cst_17 = arith.constant 2.560000e+02 : f32
    %39 = vector.broadcast %cst_17 : f32 to vector<2x1xf32>
    %40 = arith.divf %38, %39 : vector<2x1xf32>
    %41 = arith.mulf %35, %35 : vector<2x1xf32>
    %42 = arith.subf %40, %41 : vector<2x1xf32>
    %43 = vector.broadcast %35 : vector<2x1xf32> to vector<2x256xf32>
    %44 = arith.subf %31, %43 : vector<2x256xf32>
    %cst_18 = arith.constant 9.99999974E-6 : f32
    %45 = vector.broadcast %cst_18 : f32 to vector<2x1xf32>
    %46 = arith.addf %42, %45 : vector<2x1xf32>
    %47 = math.rsqrt %46 : vector<2x1xf32>
    %48 = vector.broadcast %47 : vector<2x1xf32> to vector<2x256xf32>
    %49 = arith.mulf %44, %48 : vector<2x256xf32>
    %50 = vector.broadcast %6 : vector<1x256xf32> to vector<2x256xf32>
    %51 = arith.mulf %49, %50 : vector<2x256xf32>
    %52 = vector.broadcast %7 : vector<1x256xf32> to vector<2x256xf32>
    %53 = arith.addf %51, %52 : vector<2x256xf32>
    %54 = vector.extract_strided_slice %5 {offsets = [0, 512], sizes = [2, 256], strides = [1, 1]} : vector<2x1024xf32> to vector<2x256xf32>
    %cst_19 = arith.constant dense<0.000000e+00> : vector<2xf32>
    %55 = vector.multi_reduction <add>, %54, %cst_19 [1] : vector<2x256xf32> to vector<2xf32>
    %56 = vector.shape_cast %55 : vector<2xf32> to vector<2x1xf32>
    %cst_20 = arith.constant 2.560000e+02 : f32
    %57 = vector.broadcast %cst_20 : f32 to vector<2x1xf32>
    %58 = arith.divf %56, %57 : vector<2x1xf32>
    %59 = arith.mulf %54, %54 : vector<2x256xf32>
    %cst_21 = arith.constant dense<0.000000e+00> : vector<2xf32>
    %60 = vector.multi_reduction <add>, %59, %cst_21 [1] : vector<2x256xf32> to vector<2xf32>
    %61 = vector.shape_cast %60 : vector<2xf32> to vector<2x1xf32>
    %cst_22 = arith.constant 2.560000e+02 : f32
    %62 = vector.broadcast %cst_22 : f32 to vector<2x1xf32>
    %63 = arith.divf %61, %62 : vector<2x1xf32>
    %64 = arith.mulf %58, %58 : vector<2x1xf32>
    %65 = arith.subf %63, %64 : vector<2x1xf32>
    %66 = vector.broadcast %58 : vector<2x1xf32> to vector<2x256xf32>
    %67 = arith.subf %54, %66 : vector<2x256xf32>
    %cst_23 = arith.constant 9.99999974E-6 : f32
    %68 = vector.broadcast %cst_23 : f32 to vector<2x1xf32>
    %69 = arith.addf %65, %68 : vector<2x1xf32>
    %70 = math.rsqrt %69 : vector<2x1xf32>
    %71 = vector.broadcast %70 : vector<2x1xf32> to vector<2x256xf32>
    %72 = arith.mulf %67, %71 : vector<2x256xf32>
    %73 = vector.broadcast %6 : vector<1x256xf32> to vector<2x256xf32>
    %74 = arith.mulf %72, %73 : vector<2x256xf32>
    %75 = vector.broadcast %7 : vector<1x256xf32> to vector<2x256xf32>
    %76 = arith.addf %74, %75 : vector<2x256xf32>
    %77 = vector.extract_strided_slice %5 {offsets = [0, 768], sizes = [2, 256], strides = [1, 1]} : vector<2x1024xf32> to vector<2x256xf32>
    %cst_24 = arith.constant dense<0.000000e+00> : vector<2xf32>
    %78 = vector.multi_reduction <add>, %77, %cst_24 [1] : vector<2x256xf32> to vector<2xf32>
    %79 = vector.shape_cast %78 : vector<2xf32> to vector<2x1xf32>
    %cst_25 = arith.constant 2.560000e+02 : f32
    %80 = vector.broadcast %cst_25 : f32 to vector<2x1xf32>
    %81 = arith.divf %79, %80 : vector<2x1xf32>
    %82 = arith.mulf %77, %77 : vector<2x256xf32>
    %cst_26 = arith.constant dense<0.000000e+00> : vector<2xf32>
    %83 = vector.multi_reduction <add>, %82, %cst_26 [1] : vector<2x256xf32> to vector<2xf32>
    %84 = vector.shape_cast %83 : vector<2xf32> to vector<2x1xf32>
    %cst_27 = arith.constant 2.560000e+02 : f32
    %85 = vector.broadcast %cst_27 : f32 to vector<2x1xf32>
    %86 = arith.divf %84, %85 : vector<2x1xf32>
    %87 = arith.mulf %81, %81 : vector<2x1xf32>
    %88 = arith.subf %86, %87 : vector<2x1xf32>
    %89 = vector.broadcast %81 : vector<2x1xf32> to vector<2x256xf32>
    %90 = arith.subf %77, %89 : vector<2x256xf32>
    %cst_28 = arith.constant 9.99999974E-6 : f32
    %91 = vector.broadcast %cst_28 : f32 to vector<2x1xf32>
    %92 = arith.addf %88, %91 : vector<2x1xf32>
    %93 = math.rsqrt %92 : vector<2x1xf32>
    %94 = vector.broadcast %93 : vector<2x1xf32> to vector<2x256xf32>
    %95 = arith.mulf %90, %94 : vector<2x256xf32>
    %96 = vector.broadcast %6 : vector<1x256xf32> to vector<2x256xf32>
    %97 = arith.mulf %95, %96 : vector<2x256xf32>
    %98 = vector.broadcast %7 : vector<1x256xf32> to vector<2x256xf32>
    %99 = arith.addf %97, %98 : vector<2x256xf32>
    %100 = tpu.concatenate %30, %53, %76, %99 in 1 : vector<2x256xf32>, vector<2x256xf32>, vector<2x256xf32>, vector<2x256xf32> -> vector<2x1024xf32>
    %c0_29 = arith.constant 0 : index
    %c0_30 = arith.constant 0 : index
    %101 = vector.load %arg6[%c0_29, %c0_30] : memref<2x1024xf32, #tpu.memory_space<vmem>>, vector<2x1024xf32>
    tpu.vector_store %arg6[%c0_29, %c0_30], %100 {strides = array<i32>} : memref<2x1024xf32, #tpu.memory_space<vmem>>, vector<2x1024xf32>,
    return
  }
  func.func @transform_0(%arg0: i32) -> (i32, i32) {
    %c0_i32 = arith.constant 0 : i32
    %c0_i32_0 = arith.constant 0 : i32
    %c0_i32_1 = arith.constant 0 : i32
    return %c0_i32, %c0_i32_0 : i32, i32
  }
  func.func @transform_1(%arg0: i32) -> (i32, i32) {
    %c0_i32 = arith.constant 0 : i32
    %c0_i32_0 = arith.constant 0 : i32
    %c0_i32_1 = arith.constant 0 : i32
    return %c0_i32, %c0_i32_0 : i32, i32
  }
  func.func @transform_2(%arg0: i32) -> (i32, i32) {
    %c0_i32 = arith.constant 0 : i32
    %c0_i32_0 = arith.constant 0 : i32
    %c0_i32_1 = arith.constant 0 : i32
    return %c0_i32, %c0_i32_0 : i32, i32
  }
  func.func @transform_3(%arg0: i32) -> (i32, i32) {
    %c0_i32 = arith.constant 0 : i32
    %c0_i32_0 = arith.constant 0 : i32
    %c0_i32_1 = arith.constant 0 : i32
    return %c0_i32, %c0_i32_0 : i32, i32
  }
  func.func @transform_4(%arg0: i32) -> (i32, i32) {
    %c0_i32 = arith.constant 0 : i32
    %c0_i32_0 = arith.constant 0 : i32
    %c0_i32_1 = arith.constant 0 : i32
    return %c0_i32, %c0_i32_0 : i32, i32
  }
  func.func @transform_5(%arg0: i32) -> (i32, i32) {
    %c0_i32 = arith.constant 0 : i32
    %c0_i32_0 = arith.constant 0 : i32
    %c0_i32_1 = arith.constant 0 : i32
    return %c0_i32, %c0_i32_0 : i32, i32
  }
}

</mosaic_0001>

<bundles_post_ra>
// kernel: tpu_custom_call.1
= control target key start
LH: loop header
LB: loop body
LE: loop exit
PB: predicated region body
PF: predicated region fallthrough
CT: control target
= control target key end

     0   :  { %10 = vsyncpa [#allocation3], 0  ;;  %s906_s0 = inlined_call_operand.hbm [shape: f32[2,128], index: 0, kind: input, shape index: {}]   ;;  %s907_s1 = inlined_call_operand.hbm [shape: f32[128,1024], index: 1, kind: input, shape index: {}]   ;;  %s908_s2 = inlined_call_operand.hbm [shape: f32[1,1024], index: 2, kind: input, shape index: {}]   ;;  %s909_s3 = inlined_call_operand.vmem [shape: f32[1,256], index: 3, kind: input, shape index: {}]   ;;  %s910_s4 = inlined_call_operand.hbm [shape: f32[1,256], index: 4, kind: input, shape index: {}]   ;;  %s911_s5 = inlined_call_operand.hbm [shape: f32[2,1024], index: 5, kind: output, shape index: {}]  }
   0x1   :  { %11 = vsyncpa [#allocation6], 0 }
   0x2   :  { %12 = vsyncpa [#allocation9], 0  ;;  %s29_s20 = sshll.u32 %s907_s1, 4  ;;  %s30_s20 = int_to_ptr.hbm [resolvable:$true] %s29_s20 }
   0x3   :  { %13 = vsyncpa [#allocation4], 0  ;;  %s736_s21 = smov [#allocation5]   ;;  %s19_s25 = sshll.u32 %s906_s0, 4  ;;  %s20_s25 = int_to_ptr.hbm [resolvable:$true] %s19_s25 }
   0x4   :  { %s31_s22 = sshll.u32 %s736_s21, 4  ;;  %s737_s26 = smov 1024   ;;  %s32_s22 = int_to_ptr.vmem [resolvable:$true] %s31_s22 }
   0x5   :  { %s738_s27 = smov 64   ;;  %s739_s28 = smov [#allocation2]  }
   0x6   :  { %37 = dma.hbm_to_vmem [thread:$0]  %s30_s20, 16384, %s32_s22, [#allocation6], %s737_s26, %s737_s26, %s738_s27  }
   0x7   :  { %s21_s29 = sshll.u32 %s739_s28, 4  ;;  %s43_s7 = sshll.u32 %s908_s2, 4  ;;  %s22_s29 = int_to_ptr.vmem [resolvable:$true] %s21_s29  ;;  %s44_s7 = int_to_ptr.hbm [resolvable:$true] %s43_s7 }
   0x8   :  { %24 = dma.hbm_to_vmem [thread:$0]  %s20_s25, 32, %s22_s29, [#allocation3]  }
   0x9   :  { %s56_s9 = sshll.u32 %s910_s4, 4  ;;  %s740_s10 = smov [#allocation7]   ;;  %s57_s9 = int_to_ptr.hbm [resolvable:$true] %s56_s9 }
   0xa   :  { %s45_s11 = sshll.u32 %s740_s10, 4  ;;  %s741_s0 = smov [#allocation8]   ;;  %s46_s11 = int_to_ptr.vmem [resolvable:$true] %s45_s11 }
   0xb   :  { %48 = dma.hbm_to_vmem [thread:$0]  %s44_s7, 128, %s46_s11, [#allocation6]  }
   0xc   :  { %s58_s12 = sshll.u32 %s741_s0, 4  ;;  %s59_s12 = int_to_ptr.vmem [resolvable:$true] %s58_s12 }
   0xd   :  { %61 = dma.hbm_to_vmem [thread:$0]  %s57_s9, 32, %s59_s12, [#allocation9]  }
   0xe   :  { %728 = dma.done.wait [#allocation3], 32  }
   0xf   :  { %729 = vsyncadd [#allocation3], 4294967264 }
  0x10   :  { %730 = dma.done.wait [#allocation6], 16512  }
  0x11   :  { %731 = vsyncadd [#allocation6], 4294950784 }
  0x12   :  { %732 = dma.done.wait [#allocation9], 32  }
  0x13   :  { %733 = vsyncadd [#allocation9], 4294967264  ;;  %v199_v0 = vld [vmem:[#allocation5 + $0x3c0] sm:$0xff]  ;;  %v200_v1 = vld [vmem:[#allocation5 + $0x3c8] sm:$0xff]  ;;  %vm387_vm0 = vcmask 1041408   ;;  %vm560_vm8 = vcmask 1045508  }
  0x14   :  { %v191_v2 = vld [vmem:[#allocation5 + $0x380] sm:$0xff]  ;;  %225 = vmatpush.msra.mxu0 %v199_v0  ;;  %245 = vmatpush.msra.mxu1 %v200_v1  ;;  %v192_v3 = vld [vmem:[#allocation5 + $0x388] sm:$0xff]  ;;  %v201_v4 = vld [vmem:[#allocation5 + $0x3d0] sm:$0xff]  ;;  %vm562_vm9 = vcmask 1043456   ;;  %s578_s16 = sshll.u32 %s911_s5, 4  ;;  %s579_s16 = int_to_ptr.hbm [resolvable:$true] %s578_s16 }
  0x15   :  { %v202_v5 = vld [vmem:[#allocation5 + $0x3d8] sm:$0xff]  ;;  %265 = vmatpush.msra.mxu2 %v201_v4  ;;  %v183_v6 = vld [vmem:[#allocation5 + $0x340] sm:$0xff]  ;;  %v184_v7 = vld [vmem:[#allocation5 + $0x348] sm:$0xff] }
  0x16   :  { %285 = vmatpush.msra.mxu3 %v202_v5  ;;  %v193_v8 = vld [vmem:[#allocation5 + $0x390] sm:$0xff]  ;;  %226 = vmatpush.msra.mxu0 %v191_v2  ;;  %v194_v9 = vld [vmem:[#allocation5 + $0x398] sm:$0xff]  ;;  %v175_v10 = vld [vmem:[#allocation5 + $0x300] sm:$0xff] }
  0x17   :  { %246 = vmatpush.msra.mxu1 %v192_v3  ;;  %266 = vmatpush.msra.mxu2 %v193_v8  ;;  %v176_v11 = vld [vmem:[#allocation5 + $0x308] sm:$0xff]  ;;  %v185_v12 = vld [vmem:[#allocation5 + $0x350] sm:$0xff]  ;;  %v186_v13 = vld [vmem:[#allocation5 + $0x358] sm:$0xff] }
  0x18   :  { %286 = vmatpush.msra.mxu3 %v194_v9  ;;  %227 = vmatpush.msra.mxu0 %v183_v6  ;;  %v177_v14 = vld [vmem:[#allocation5 + $0x310] sm:$0xff]  ;;  %v178_v15 = vld [vmem:[#allocation5 + $0x318] sm:$0xff]  ;;  %v167_v16 = vld [vmem:[#allocation5 + $0x2c0] sm:$0xff] }
  0x19   :  { %247 = vmatpush.msra.mxu1 %v184_v7  ;;  %267 = vmatpush.msra.mxu2 %v185_v12  ;;  %v168_v17 = vld [vmem:[#allocation5 + $0x2c8] sm:$0xff]  ;;  %v169_v18 = vld [vmem:[#allocation5 + $0x2d0] sm:$0xff]  ;;  %v170_v19 = vld [vmem:[#allocation5 + $0x2d8] sm:$0xff] }
  0x1a   :  { %287 = vmatpush.msra.mxu3 %v186_v13  ;;  %228 = vmatpush.msra.mxu0 %v175_v10  ;;  %v159_v20 = vld [vmem:[#allocation5 + $0x280] sm:$0xff]  ;;  %v160_v21 = vld [vmem:[#allocation5 + $0x288] sm:$0xff]  ;;  %v161_v22 = vld [vmem:[#allocation5 + $0x290] sm:$0xff] }
  0x1b   :  { %248 = vmatpush.msra.mxu1 %v176_v11  ;;  %268 = vmatpush.msra.mxu2 %v177_v14  ;;  %v162_v23 = vld [vmem:[#allocation5 + $0x298] sm:$0xff]  ;;  %v151_v24 = vld [vmem:[#allocation5 + $0x240] sm:$0xff]  ;;  %v152_v25 = vld [vmem:[#allocation5 + $0x248] sm:$0xff] }
  0x1c   :  { %288 = vmatpush.msra.mxu3 %v178_v15  ;;  %229 = vmatpush.msra.mxu0 %v167_v16  ;;  %v153_v26 = vld [vmem:[#allocation5 + $0x250] sm:$0xff]  ;;  %v154_v27 = vld [vmem:[#allocation5 + $0x258] sm:$0xff]  ;;  %v143_v28 = vld [vmem:[#allocation5 + $0x200] sm:$0xff] }
  0x1d   :  { %249 = vmatpush.msra.mxu1 %v168_v17  ;;  %269 = vmatpush.msra.mxu2 %v169_v18  ;;  %v144_v29 = vld [vmem:[#allocation5 + $0x208] sm:$0xff]  ;;  %v145_v30 = vld [vmem:[#allocation5 + $0x210] sm:$0xff]  ;;  %v146_v31 = vld [vmem:[#allocation5 + $0x218] sm:$0xff] }
  0x1e   :  { %289 = vmatpush.msra.mxu3 %v170_v19  ;;  %230 = vmatpush.msra.mxu0 %v159_v20  ;;  %v135_v32 = vld [vmem:[#allocation5 + $0x1c0] sm:$0xff]  ;;  %v136_v33 = vld [vmem:[#allocation5 + $0x1c8] sm:$0xff]  ;;  %v137_v34 = vld [vmem:[#allocation5 + $0x1d0] sm:$0xff] }
  0x1f   :  { %250 = vmatpush.msra.mxu1 %v160_v21  ;;  %270 = vmatpush.msra.mxu2 %v161_v22  ;;  %v138_v35 = vld [vmem:[#allocation5 + $0x1d8] sm:$0xff]  ;;  %v127_v36 = vld [vmem:[#allocation5 + $0x180] sm:$0xff]  ;;  %v128_v37 = vld [vmem:[#allocation5 + $0x188] sm:$0xff] }
  0x20   :  { %290 = vmatpush.msra.mxu3 %v162_v23  ;;  %231 = vmatpush.msra.mxu0 %v151_v24  ;;  %v129_v38 = vld [vmem:[#allocation5 + $0x190] sm:$0xff]  ;;  %v130_v39 = vld [vmem:[#allocation5 + $0x198] sm:$0xff]  ;;  %v119_v40 = vld [vmem:[#allocation5 + $0x140] sm:$0xff] }
  0x21   :  { %251 = vmatpush.msra.mxu1 %v152_v25  ;;  %271 = vmatpush.msra.mxu2 %v153_v26  ;;  %v120_v41 = vld [vmem:[#allocation5 + $0x148] sm:$0xff]  ;;  %v121_v42 = vld [vmem:[#allocation5 + $0x150] sm:$0xff]  ;;  %v122_v43 = vld [vmem:[#allocation5 + $0x158] sm:$0xff] }
  0x22   :  { %291 = vmatpush.msra.mxu3 %v154_v27  ;;  %232 = vmatpush.msra.mxu0 %v143_v28  ;;  %v111_v44 = vld [vmem:[#allocation5 + $0x100] sm:$0xff]  ;;  %v112_v45 = vld [vmem:[#allocation5 + $0x108] sm:$0xff]  ;;  %v113_v46 = vld [vmem:[#allocation5 + $0x110] sm:$0xff] }
  0x23   :  { %252 = vmatpush.msra.mxu1 %v144_v29  ;;  %272 = vmatpush.msra.mxu2 %v145_v30  ;;  %v114_v47 = vld [vmem:[#allocation5 + $0x118] sm:$0xff]  ;;  %v103_v48 = vld [vmem:[#allocation5 + $0xc0] sm:$0xff]  ;;  %v104_v49 = vld [vmem:[#allocation5 + $0xc8] sm:$0xff] }
  0x24   :  { %292 = vmatpush.msra.mxu3 %v146_v31  ;;  %233 = vmatpush.msra.mxu0 %v135_v32  ;;  %v105_v50 = vld [vmem:[#allocation5 + $0xd0] sm:$0xff]  ;;  %v106_v51 = vld [vmem:[#allocation5 + $0xd8] sm:$0xff]  ;;  %v95_v52 = vld [vmem:[#allocation5 + $0x80] sm:$0xff] }
  0x25   :  { %253 = vmatpush.msra.mxu1 %v136_v33  ;;  %273 = vmatpush.msra.mxu2 %v137_v34  ;;  %v96_v53 = vld [vmem:[#allocation5 + $0x88] sm:$0xff]  ;;  %v97_v54 = vld [vmem:[#allocation5 + $0x90] sm:$0xff]  ;;  %v98_v55 = vld [vmem:[#allocation5 + $0x98] sm:$0xff] }
  0x26   :  { %293 = vmatpush.msra.mxu3 %v138_v35  ;;  %234 = vmatpush.msra.mxu0 %v127_v36  ;;  %v87_v56 = vld [vmem:[#allocation5 + $0x40] sm:$0xff]  ;;  %v88_v57 = vld [vmem:[#allocation5 + $0x48] sm:$0xff]  ;;  %v89_v58 = vld [vmem:[#allocation5 + $0x50] sm:$0xff] }
  0x27   :  { %254 = vmatpush.msra.mxu1 %v128_v37  ;;  %274 = vmatpush.msra.mxu2 %v129_v38  ;;  %v90_v59 = vld [vmem:[#allocation5 + $0x58] sm:$0xff]  ;;  %v79_v60 = vld [vmem:[#allocation5] sm:$0xff]  ;;  %v80_v61 = vld [vmem:[#allocation5 + $0x8] sm:$0xff] }
  0x28   :  { %294 = vmatpush.msra.mxu3 %v130_v39  ;;  %235 = vmatpush.msra.mxu0 %v119_v40  ;;  %v786_v62 = vld [vmem:[#allocation2] sm:$0x3]  ;;  %v203_v63 = vld [vmem:[#allocation5 + $0x3e0] sm:$0xff]  ;;  %v204_v0 = vld [vmem:[#allocation5 + $0x3e8] sm:$0xff] }
  0x29   :  { %255 = vmatpush.msra.mxu1 %v120_v41  ;;  %275 = vmatpush.msra.mxu2 %v121_v42  ;;  %v81_v1 = vld [vmem:[#allocation5 + $0x10] sm:$0xff]  ;;  %v82_v2 = vld [vmem:[#allocation5 + $0x18] sm:$0xff]  ;;  %v195_v3 = vld [vmem:[#allocation5 + $0x3a0] sm:$0xff] }
  0x2a   :  { %295 = vmatpush.msra.mxu3 %v122_v43  ;;  %236 = vmatpush.msra.mxu0 %v111_v44  ;;  %v196_v4 = vld [vmem:[#allocation5 + $0x3a8] sm:$0xff]  ;;  %v205_v5 = vld [vmem:[#allocation5 + $0x3f0] sm:$0xff]  ;;  %v206_v6 = vld [vmem:[#allocation5 + $0x3f8] sm:$0xff] }
  0x2b   :  { %256 = vmatpush.msra.mxu1 %v112_v45  ;;  %276 = vmatpush.msra.mxu2 %v113_v46  ;;  %v187_v7 = vld [vmem:[#allocation5 + $0x360] sm:$0xff]  ;;  %v188_v8 = vld [vmem:[#allocation5 + $0x368] sm:$0xff]  ;;  %v197_v9 = vld [vmem:[#allocation5 + $0x3b0] sm:$0xff] }
  0x2c   :  { %296 = vmatpush.msra.mxu3 %v114_v47  ;;  %237 = vmatpush.msra.mxu0 %v103_v48  ;;  %v198_v10 = vld [vmem:[#allocation5 + $0x3b8] sm:$0xff]  ;;  %v179_v11 = vld [vmem:[#allocation5 + $0x320] sm:$0xff]  ;;  %v180_v12 = vld [vmem:[#allocation5 + $0x328] sm:$0xff] }
  0x2d   :  { %257 = vmatpush.msra.mxu1 %v104_v49  ;;  %277 = vmatpush.msra.mxu2 %v105_v50  ;;  %v189_v13 = vld [vmem:[#allocation5 + $0x370] sm:$0xff]  ;;  %v190_v14 = vld [vmem:[#allocation5 + $0x378] sm:$0xff]  ;;  %v171_v15 = vld [vmem:[#allocation5 + $0x2e0] sm:$0xff] }
  0x2e   :  { %297 = vmatpush.msra.mxu3 %v106_v51  ;;  %238 = vmatpush.msra.mxu0 %v95_v52  ;;  %v172_v16 = vld [vmem:[#allocation5 + $0x2e8] sm:$0xff]  ;;  %v181_v17 = vld [vmem:[#allocation5 + $0x330] sm:$0xff]  ;;  %v182_v18 = vld [vmem:[#allocation5 + $0x338] sm:$0xff] }
  0x2f   :  { %258 = vmatpush.msra.mxu1 %v96_v53  ;;  %278 = vmatpush.msra.mxu2 %v97_v54  ;;  %v163_v19 = vld [vmem:[#allocation5 + $0x2a0] sm:$0xff]  ;;  %v164_v20 = vld [vmem:[#allocation5 + $0x2a8] sm:$0xff]  ;;  %v173_v21 = vld [vmem:[#allocation5 + $0x2f0] sm:$0xff] }
  0x30   :  { %298 = vmatpush.msra.mxu3 %v98_v55  ;;  %239 = vmatpush.msra.mxu0 %v87_v56  ;;  %v174_v22 = vld [vmem:[#allocation5 + $0x2f8] sm:$0xff]  ;;  %v155_v23 = vld [vmem:[#allocation5 + $0x260] sm:$0xff]  ;;  %v156_v24 = vld [vmem:[#allocation5 + $0x268] sm:$0xff] }
  0x31   :  { %259 = vmatpush.msra.mxu1 %v88_v57  ;;  %279 = vmatpush.msra.mxu2 %v89_v58  ;;  %v165_v25 = vld [vmem:[#allocation5 + $0x2b0] sm:$0xff]  ;;  %v166_v26 = vld [vmem:[#allocation5 + $0x2b8] sm:$0xff]  ;;  %v147_v27 = vld [vmem:[#allocation5 + $0x220] sm:$0xff] }
  0x32   :  { %299 = vmatpush.msra.mxu3 %v90_v59  ;;  %240 = vmatpush.msra.mxu0 %v79_v60  ;;  %v148_v28 = vld [vmem:[#allocation5 + $0x228] sm:$0xff]  ;;  %v157_v29 = vld [vmem:[#allocation5 + $0x270] sm:$0xff]  ;;  %v158_v30 = vld [vmem:[#allocation5 + $0x278] sm:$0xff] }
  0x33   :  { %260 = vmatpush.msra.mxu1 %v80_v61  ;;  %241 = vmatmul.f32.vlgmr.msra.gmra.mxu0 %v786_v62  ;;  %v139_v31 = vld [vmem:[#allocation5 + $0x1e0] sm:$0xff]  ;;  %v140_v32 = vld [vmem:[#allocation5 + $0x1e8] sm:$0xff]  ;;  %v149_v33 = vld [vmem:[#allocation5 + $0x230] sm:$0xff] }
  0x34   :  { %261 = vmatmul.f32.vlgmr.msra.gmra.mxu1 %v786_v62  ;;  %305 = vmatpush.msrb.mxu0 %v203_v63  ;;  %v150_v34 = vld [vmem:[#allocation5 + $0x238] sm:$0xff]  ;;  %v131_v35 = vld [vmem:[#allocation5 + $0x1a0] sm:$0xff]  ;;  %v132_v36 = vld [vmem:[#allocation5 + $0x1a8] sm:$0xff] }
  0x35   :  { %325 = vmatpush.msrb.mxu1 %v204_v0  ;;  %280 = vmatpush.msra.mxu2 %v81_v1  ;;  %v141_v37 = vld [vmem:[#allocation5 + $0x1f0] sm:$0xff]  ;;  %v142_v38 = vld [vmem:[#allocation5 + $0x1f8] sm:$0xff]  ;;  %v123_v39 = vld [vmem:[#allocation5 + $0x160] sm:$0xff] }
  0x36   :  { %300 = vmatpush.msra.mxu3 %v82_v2  ;;  %281 = vmatmul.f32.vlgmr.msra.gmra.mxu2 %v786_v62  ;;  %v124_v40 = vld [vmem:[#allocation5 + $0x168] sm:$0xff]  ;;  %v133_v41 = vld [vmem:[#allocation5 + $0x1b0] sm:$0xff]  ;;  %v134_v42 = vld [vmem:[#allocation5 + $0x1b8] sm:$0xff] }
  0x37   :  { %301 = vmatmul.f32.vlgmr.msra.gmra.mxu3 %v786_v62  ;;  %306 = vmatpush.msrb.mxu0 %v195_v3  ;;  %v115_v43 = vld [vmem:[#allocation5 + $0x120] sm:$0xff]  ;;  %v116_v44 = vld [vmem:[#allocation5 + $0x128] sm:$0xff]  ;;  %v125_v45 = vld [vmem:[#allocation5 + $0x170] sm:$0xff] }
  0x38   :  { %326 = vmatpush.msrb.mxu1 %v196_v4  ;;  %345 = vmatpush.msrb.mxu2 %v205_v5  ;;  %v126_v46 = vld [vmem:[#allocation5 + $0x178] sm:$0xff]  ;;  %v107_v47 = vld [vmem:[#allocation5 + $0xe0] sm:$0xff]  ;;  %v108_v48 = vld [vmem:[#allocation5 + $0xe8] sm:$0xff] }
  0x39   :  { %365 = vmatpush.msrb.mxu3 %v206_v6  ;;  %307 = vmatpush.msrb.mxu0 %v187_v7  ;;  %v117_v49 = vld [vmem:[#allocation5 + $0x130] sm:$0xff]  ;;  %v118_v50 = vld [vmem:[#allocation5 + $0x138] sm:$0xff]  ;;  %v99_v51 = vld [vmem:[#allocation5 + $0xa0] sm:$0xff] }
  0x3a   :  { %327 = vmatpush.msrb.mxu1 %v188_v8  ;;  %346 = vmatpush.msrb.mxu2 %v197_v9  ;;  %v100_v52 = vld [vmem:[#allocation5 + $0xa8] sm:$0xff]  ;;  %v109_v53 = vld [vmem:[#allocation5 + $0xf0] sm:$0xff]  ;;  %v110_v54 = vld [vmem:[#allocation5 + $0xf8] sm:$0xff] }
  0x3b   :  { %366 = vmatpush.msrb.mxu3 %v198_v10  ;;  %308 = vmatpush.msrb.mxu0 %v179_v11  ;;  %v91_v55 = vld [vmem:[#allocation5 + $0x60] sm:$0xff]  ;;  %v92_v56 = vld [vmem:[#allocation5 + $0x68] sm:$0xff]  ;;  %v101_v57 = vld [vmem:[#allocation5 + $0xb0] sm:$0xff] }
  0x3c   :  { %328 = vmatpush.msrb.mxu1 %v180_v12  ;;  %347 = vmatpush.msrb.mxu2 %v189_v13  ;;  %v102_v58 = vld [vmem:[#allocation5 + $0xb8] sm:$0xff]  ;;  %v83_v59 = vld [vmem:[#allocation5 + $0x20] sm:$0xff]  ;;  %v84_v60 = vld [vmem:[#allocation5 + $0x28] sm:$0xff] }
  0x3d   :  { %367 = vmatpush.msrb.mxu3 %v190_v14  ;;  %309 = vmatpush.msrb.mxu0 %v171_v15  ;;  %v93_v61 = vld [vmem:[#allocation5 + $0x70] sm:$0xff]  ;;  %v94_v63 = vld [vmem:[#allocation5 + $0x78] sm:$0xff]  ;;  %v207_v2 = vld [vmem:[#allocation7] sm:$0xff] }
  0x3e   :  { %329 = vmatpush.msrb.mxu1 %v172_v16  ;;  %348 = vmatpush.msrb.mxu2 %v181_v17  ;;  %v85_v0 = vld [vmem:[#allocation5 + $0x30] sm:$0xff]  ;;  %v86_v1 = vld [vmem:[#allocation5 + $0x38] sm:$0xff]  ;;  %v209_v3 = vperm.slane %v207_v2, 0  ;;  %v210_v4 = vperm.slane %v207_v2, 1  ;;  %v211_v15 = vperm.slane %v207_v2, 2  ;;  %v212_v16 = vperm.slane %v207_v2, 3 }
  0x3f   :  { %368 = vmatpush.msrb.mxu3 %v182_v18  ;;  %310 = vmatpush.msrb.mxu0 %v163_v19 }
  0x40   :  { %330 = vmatpush.msrb.mxu1 %v164_v20  ;;  %349 = vmatpush.msrb.mxu2 %v173_v21 }
  0x41   :  { %369 = vmatpush.msrb.mxu3 %v174_v22  ;;  %311 = vmatpush.msrb.mxu0 %v155_v23 }
  0x42   :  { %331 = vmatpush.msrb.mxu1 %v156_v24  ;;  %350 = vmatpush.msrb.mxu2 %v165_v25 }
  0x43   :  { %370 = vmatpush.msrb.mxu3 %v166_v26  ;;  %312 = vmatpush.msrb.mxu0 %v147_v27 }
  0x44   :  { %332 = vmatpush.msrb.mxu1 %v148_v28  ;;  %351 = vmatpush.msrb.mxu2 %v157_v29 }
  0x45   :  { %371 = vmatpush.msrb.mxu3 %v158_v30  ;;  %313 = vmatpush.msrb.mxu0 %v139_v31  ;;  %v213_v30 = vperm.slane %v207_v2, 4  ;;  %v214_v31 = vperm.slane %v207_v2, 5 }
  0x46   :  { %333 = vmatpush.msrb.mxu1 %v140_v32  ;;  %352 = vmatpush.msrb.mxu2 %v149_v33 }
  0x47   :  { %372 = vmatpush.msrb.mxu3 %v150_v34  ;;  %314 = vmatpush.msrb.mxu0 %v131_v35 }
  0x48   :  { %334 = vmatpush.msrb.mxu1 %v132_v36  ;;  %353 = vmatpush.msrb.mxu2 %v141_v37 }
  0x49   :  { %373 = vmatpush.msrb.mxu3 %v142_v38  ;;  %315 = vmatpush.msrb.mxu0 %v123_v39 }
  0x4a   :  { %335 = vmatpush.msrb.mxu1 %v124_v40  ;;  %354 = vmatpush.msrb.mxu2 %v133_v41  ;;  %v215_v41 = vperm.slane %v207_v2, 6 }
  0x4b   :  { %374 = vmatpush.msrb.mxu3 %v134_v42  ;;  %316 = vmatpush.msrb.mxu0 %v115_v43  ;;  %v216_v42 = vperm.slane %v207_v2, 7 }
  0x4c   :  { %336 = vmatpush.msrb.mxu1 %v116_v44  ;;  %355 = vmatpush.msrb.mxu2 %v125_v45 }
  0x4d   :  { %375 = vmatpush.msrb.mxu3 %v126_v46  ;;  %317 = vmatpush.msrb.mxu0 %v107_v47 }
  0x4e   :  { %337 = vmatpush.msrb.mxu1 %v108_v48  ;;  %356 = vmatpush.msrb.mxu2 %v117_v49 }
  0x4f   :  { %376 = vmatpush.msrb.mxu3 %v118_v50  ;;  %318 = vmatpush.msrb.mxu0 %v99_v51 }
  0x50   :  { %338 = vmatpush.msrb.mxu1 %v100_v52  ;;  %357 = vmatpush.msrb.mxu2 %v109_v53 }
  0x51   :  { %377 = vmatpush.msrb.mxu3 %v110_v54  ;;  %319 = vmatpush.msrb.mxu0 %v91_v55 }
  0x52   :  { %339 = vmatpush.msrb.mxu1 %v92_v56  ;;  %358 = vmatpush.msrb.mxu2 %v101_v57 }
  0x53   :  { %378 = vmatpush.msrb.mxu3 %v102_v58  ;;  %320 = vmatpush.msrb.mxu0 %v83_v59  ;;  %v742_v58 = vmov 256.0  }
  0x54   :  { %340 = vmatpush.msrb.mxu1 %v84_v60  ;;  %359 = vmatpush.msrb.mxu2 %v93_v61  ;;  %598 = vrcp.f32 %v742_v58 }
  0x55   :  { %379 = vmatpush.msrb.mxu3 %v94_v63  ;;  %321 = vmatmul.f32.vlgmr.msrb.gmra.mxu0 %v786_v62 }
  0x56   :  { %341 = vmatmul.f32.vlgmr.msrb.gmra.mxu1 %v786_v62  ;;  %360 = vmatpush.msrb.mxu2 %v85_v0 }
  0x57   :  { %380 = vmatpush.msrb.mxu3 %v86_v1  ;;  %361 = vmatmul.f32.vlgmr.msrb.gmra.mxu2 %v786_v62 }
  0x58   :  { %381 = vmatmul.f32.vlgmr.msrb.gmra.mxu3 %v786_v62 }
  0x5a   :  { %v599_v59 = vpop.eup %598 }
  0x5b   :  { %v394_v60 = vmul.f32 256.0, %v599_v59  ;;  %vm398_vm1 = vweird.f32 %v599_v59 }
  0x5d   :  { %v395_v61 = vsub.f32 1.0, %v394_v60 }
  0x5f   :  { %v396_v63 = vmul.f32 %v599_v59, %v395_v61 }
  0x61   :  { %v397_v0 = vadd.f32 %v599_v59, %v396_v63 }
  0x63   :  { %v852_v1 = vsel %vm398_vm1, %v599_v59, %v397_v0 }
  0xb0   :  { %v242_v5 = vpop.f32.mrf.mxu0 }
  0xb1   :  { %v262_v6 = vpop.f32.mrf.mxu1  ;;  %v796_v7 = vadd.f32 %v242_v5, %v209_v3 }
  0xb2   :  { %v798_v8 = vadd.f32 %v262_v6, %v210_v4 }
  0xb3   :  { %v388_v9 = vsel %vm387_vm0, %v796_v7, 0.0  ;;  %v401_v11 = vmul.f32 %v796_v7, %v796_v7 }
  0xb4   :  { %v389_v10 = vsel %vm387_vm0, %v798_v8, 0.0  ;;  %v402_v62 = vmul.f32 %v798_v8, %v798_v8 }
  0xb5   :  { %v390_v12 = vadd.f32 %v389_v10, %v388_v9  ;;  %v403_v13 = vsel %vm387_vm0, %v401_v11, 0.0 }
  0xb6   :  { %v404_v14 = vsel %vm387_vm0, %v402_v62, 0.0 }
  0xb7   :  { %391 = vadd.xlane.f32.xlu0 %v390_v12  ;;  %v405_v17 = vadd.f32 %v404_v14, %v403_v13 }
  0xb9   :  { %406 = vadd.xlane.f32.xlu2 %v405_v17  ;;  %v282_v18 = vpop.f32.mrf.mxu2 }
  0xba   :  { %v302_v19 = vpop.f32.mrf.mxu3  ;;  %v810_v20 = vadd.f32 %v282_v18, %v211_v15 }
  0xbb   :  { %v812_v21 = vadd.f32 %v302_v19, %v212_v16 }
  0xbc   :  { %v440_v22 = vsel %vm387_vm0, %v810_v20, 0.0  ;;  %v446_v24 = vmul.f32 %v810_v20, %v810_v20 }
  0xbd   :  { %v441_v23 = vsel %vm387_vm0, %v812_v21, 0.0  ;;  %v447_v25 = vmul.f32 %v812_v21, %v812_v21 }
  0xbe   :  { %v442_v26 = vadd.f32 %v441_v23, %v440_v22  ;;  %v448_v27 = vsel %vm387_vm0, %v446_v24, 0.0 }
  0xbf   :  { %v449_v28 = vsel %vm387_vm0, %v447_v25, 0.0 }
  0xc0   :  { %443 = vadd.xlane.f32.xlu0 %v442_v26  ;;  %v450_v29 = vadd.f32 %v449_v28, %v448_v27  ;;  %v385_v26 = vld [vmem:[%s909_s3] sm:$0x3]  ;;  %s743_s3 = smov [#allocation10]  }
  0xc1   :  { %s576_s13 = sshll.u32 %s743_s3, 4  ;;  %s577_s13 = int_to_ptr.vmem [resolvable:$true] %s576_s13 }
  0xc2   :  { %451 = vadd.xlane.f32.xlu2 %v450_v29 }
  0xd2   :  { %v322_v32 = vpop.f32.mrf.mxu0 }
  0xd3   :  { %v342_v33 = vpop.f32.mrf.mxu1  ;;  %v824_v34 = vadd.f32 %v322_v32, %v213_v30 }
  0xd4   :  { %v826_v35 = vadd.f32 %v342_v33, %v214_v31  ;;  %v862_v31 = vperm.slane %v385_v26, 1 }
  0xd5   :  { %v475_v36 = vsel %vm387_vm0, %v824_v34, 0.0  ;;  %v481_v38 = vmul.f32 %v824_v34, %v824_v34 }
  0xd6   :  { %v476_v37 = vsel %vm387_vm0, %v826_v35, 0.0  ;;  %v482_v39 = vmul.f32 %v826_v35, %v826_v35 }
  0xd7   :  { %v477_v40 = vadd.f32 %v476_v37, %v475_v36  ;;  %v483_v43 = vsel %vm387_vm0, %v481_v38, 0.0  ;;  %v386_v36 = vld [vmem:[#allocation8] sm:$0x3] }
  0xd8   :  { %v484_v44 = vsel %vm387_vm0, %v482_v39, 0.0 }
  0xd9   :  { %478 = vadd.xlane.f32.xlu1 %v477_v40  ;;  %v485_v45 = vadd.f32 %v484_v44, %v483_v43  ;;  %v866_v40 = vperm.slane %v386_v36, 1 }
  0xda   :  { %v362_v46 = vpop.f32.mrf.mxu2 }
  0xdb   :  { %v382_v47 = vpop.f32.mrf.mxu3  ;;  %486 = vadd.xlane.f32.xlu0 %v485_v45  ;;  %v838_v48 = vadd.f32 %v362_v46, %v215_v41 }
  0xdc   :  { %v840_v49 = vadd.f32 %v382_v47, %v216_v42  ;;  %v868_v42 = vperm.slane %v385_v26, 0 }
  0xdd   :  { %v510_v50 = vsel %vm387_vm0, %v838_v48, 0.0  ;;  %v516_v53 = vmul.f32 %v838_v48, %v838_v48 }
  0xde   :  { %v511_v51 = vsel %vm387_vm0, %v840_v49, 0.0  ;;  %v517_v54 = vmul.f32 %v840_v49, %v840_v49 }
  0xdf   :  { %v512_v52 = vadd.f32 %v511_v51, %v510_v50  ;;  %v518_v55 = vsel %vm387_vm0, %v516_v53, 0.0 }
  0xe0   :  { %v519_v56 = vsel %vm387_vm0, %v517_v54, 0.0 }
  0xe1   :  { %513 = vadd.xlane.f32.xlu1 %v512_v52  ;;  %v520_v57 = vadd.f32 %v519_v56, %v518_v55 }
  0xe9   :  { %521 = vadd.xlane.f32.xlu1 %v520_v57  ;;  %v878_v57 = vperm.slane %v386_v36, 0 }
 0x12a   :  { %v392_v2 = vpop.xlane.xlu0 %391 }
 0x12b   :  { %v400_v3 = vmul.f32 %v852_v1, %v392_v2 }
 0x12c   :  { %v407_v4 = vpop.xlane.xlu2 %406 }
 0x12d   :  { %v408_v5 = vmul.f32 %v407_v4, %v852_v1  ;;  %v409_v6 = vmul.f32 %v400_v3, %v400_v3  ;;  %v412_v28 = vsub.f32 %v798_v8, %v400_v3  ;;  %v411_v38 = vsub.f32 %v796_v7, %v400_v3 }
 0x12f   :  { %v410_v9 = vsub.f32 %v408_v5, %v409_v6 }
 0x131   :  { %v413_v10 = vadd.f32 1e-05, %v410_v9 }
 0x133   :  { %600 = vrsqrt.f32 %v413_v10  ;;  %v444_v11 = vpop.xlane.xlu0 %443  ;;  %vm420_vm2 = vweird.f32 %v413_v10 }
 0x134   :  { %v445_v62 = vmul.f32 %v444_v11, %v852_v1 }
 0x135   :  { %v452_v12 = vpop.xlane.xlu2 %451 }
 0x136   :  { %v453_v13 = vmul.f32 %v452_v12, %v852_v1  ;;  %v454_v14 = vmul.f32 %v445_v62, %v445_v62  ;;  %v456_v43 = vsub.f32 %v810_v20, %v445_v62  ;;  %v457_v44 = vsub.f32 %v812_v21, %v445_v62 }
 0x138   :  { %v455_v15 = vsub.f32 %v453_v13, %v454_v14 }
 0x139   :  { %v601_v16 = vpop.eup %600 }
 0x13a   :  { %v415_v17 = vmul.f32 %v601_v16, %v413_v10  ;;  %v458_v18 = vadd.f32 1e-05, %v455_v15  ;;  %vm421_vm3 = vweird.f32 %v601_v16 }
 0x13b   :  { %vm422_vm4 = vmor %vm420_vm2, %vm421_vm3 }
 0x13c   :  { %v416_v19 = vmul.f32 %v601_v16, %v415_v17  ;;  %602 = vrsqrt.f32 %v458_v18  ;;  %vm465_vm5 = vweird.f32 %v458_v18 }
 0x13e   :  { %v417_v22 = vmul.f32 0.5, %v416_v19 }
 0x140   :  { %v418_v23 = vsub.f32 1.5, %v417_v22 }
 0x142   :  { %v603_v24 = vpop.eup %602  ;;  %v419_v25 = vmul.f32 %v601_v16, %v418_v23 }
 0x143   :  { %v460_v27 = vmul.f32 %v603_v24, %v458_v18  ;;  %vm466_vm6 = vweird.f32 %v603_v24 }
 0x144   :  { %v423_v29 = vsel %vm422_vm4, %v601_v16, %v419_v25  ;;  %vm467_vm7 = vmor %vm465_vm5, %vm466_vm6 }
 0x145   :  { %v461_v30 = vmul.f32 %v603_v24, %v460_v27  ;;  %v425_v32 = vmul.f32 %v423_v29, %v412_v28  ;;  %v424_v8 = vmul.f32 %v423_v29, %v411_v38 }
 0x147   :  { %v462_v33 = vmul.f32 0.5, %v461_v30  ;;  %v432_v39 = vmul.f32 %v862_v31, %v425_v32  ;;  %v431_v55 = vmul.f32 %v868_v42, %v424_v8 }
 0x149   :  { %v463_v37 = vsub.f32 1.5, %v462_v33  ;;  %v439_v52 = vadd.f32 %v866_v40, %v432_v39  ;;  %v438_v0 = vadd.f32 %v878_v57, %v431_v55 }
 0x14b   :  { %v464_v41 = vmul.f32 %v603_v24, %v463_v37  ;;  %v553_v60 = vrot.slane %v439_v52, 6 }
 0x14c   :  { %v479_v45 = vpop.xlane.xlu1 %478 }
 0x14d   :  { %v468_v46 = vsel %vm467_vm7, %v603_v24, %v464_v41  ;;  %v480_v47 = vmul.f32 %v479_v45, %v852_v1  ;;  %v559_v4 = vsel %vm387_vm0, %v438_v0, %v553_v60 }
 0x14e   :  { %v469_v50 = vmul.f32 %v468_v46, %v456_v43  ;;  %v470_v51 = vmul.f32 %v468_v46, %v457_v44  ;;  %v487_v7 = vpop.xlane.xlu0 %486 }
 0x14f   :  { %v489_v53 = vmul.f32 %v480_v47, %v480_v47  ;;  %v488_v54 = vmul.f32 %v487_v7, %v852_v1  ;;  %v492_v25 = vsub.f32 %v826_v35, %v480_v47 }
 0x150   :  { %v471_v56 = vmul.f32 %v469_v50, %v868_v42  ;;  %v472_v20 = vmul.f32 %v470_v51, %v862_v31 }
 0x151   :  { %v490_v21 = vsub.f32 %v488_v54, %v489_v53 }
 0x152   :  { %v473_v58 = vadd.f32 %v471_v56, %v878_v57  ;;  %v474_v59 = vadd.f32 %v472_v20, %v866_v40 }
 0x153   :  { %v493_v61 = vadd.f32 1e-05, %v490_v21 }
 0x154   :  { %v514_v63 = vpop.xlane.xlu1 %513  ;;  %v554_v2 = vrot.slane %v473_v58, 4  ;;  %v555_v3 = vrot.slane %v474_v59, 2 }
 0x155   :  { %604 = vrsqrt.f32 %v493_v61  ;;  %v515_v9 = vmul.f32 %v514_v63, %v852_v1  ;;  %vm500_vm11 = vweird.f32 %v493_v61 }
 0x156   :  { %v561_v5 = vsel %vm560_vm8, %v554_v2, %v555_v3 }
 0x157   :  { %v563_v6 = vsel %vm562_vm9, %v559_v4, %v561_v5  ;;  %v524_v12 = vmul.f32 %v515_v9, %v515_v9  ;;  %v526_v36 = vsub.f32 %v838_v48, %v515_v9  ;;  %v527_v37 = vsub.f32 %v840_v49, %v515_v9 }
 0x158   :  { %569 = vst [vmem:[#allocation10] sm:$0xff] %v563_v6 }
 0x15b   :  { %v605_v10 = vpop.eup %604 }
 0x15c   :  { %v495_v11 = vmul.f32 %v605_v10, %v493_v61  ;;  %v522_v62 = vpop.xlane.xlu1 %521  ;;  %vm501_vm10 = vweird.f32 %v605_v10 }
 0x15d   :  { %v523_v13 = vmul.f32 %v522_v62, %v852_v1  ;;  %vm502_vm12 = vmor %vm500_vm11, %vm501_vm10  ;;  %v491_v1 = vsub.f32 %v824_v34, %v480_v47 }
 0x15e   :  { %v496_v14 = vmul.f32 %v605_v10, %v495_v11 }
 0x15f   :  { %v525_v15 = vsub.f32 %v523_v13, %v524_v12 }
 0x160   :  { %v497_v16 = vmul.f32 0.5, %v496_v14 }
 0x161   :  { %v528_v17 = vadd.f32 1e-05, %v525_v15 }
 0x162   :  { %v498_v18 = vsub.f32 1.5, %v497_v16 }
 0x163   :  { %606 = vrsqrt.f32 %v528_v17  ;;  %vm535_vm14 = vweird.f32 %v528_v17 }
 0x164   :  { %v499_v19 = vmul.f32 %v605_v10, %v498_v18 }
 0x166   :  { %v503_v23 = vsel %vm502_vm12, %v605_v10, %v499_v19 }
 0x167   :  { %v505_v27 = vmul.f32 %v503_v23, %v492_v25  ;;  %v504_v33 = vmul.f32 %v503_v23, %v491_v1 }
 0x169   :  { %v607_v22 = vpop.eup %606  ;;  %v507_v30 = vmul.f32 %v505_v27, %v862_v31  ;;  %v506_v8 = vmul.f32 %v504_v33, %v868_v42 }
 0x16a   :  { %v530_v24 = vmul.f32 %v607_v22, %v528_v17  ;;  %vm536_vm13 = vweird.f32 %v607_v22 }
 0x16b   :  { %vm537_vm15 = vmor %vm535_vm14, %vm536_vm13  ;;  %v509_v41 = vadd.f32 %v507_v30, %v866_v40  ;;  %v508_v48 = vadd.f32 %v506_v8, %v878_v57 }
 0x16c   :  { %v531_v26 = vmul.f32 %v607_v22, %v530_v24 }
 0x16d   :  { %v556_v46 = vrot.slane %v509_v41, 6 }
 0x16e   :  { %v532_v28 = vmul.f32 0.5, %v531_v26 }
 0x16f   :  { %v564_v50 = vsel %vm387_vm0, %v508_v48, %v556_v46 }
 0x170   :  { %v533_v29 = vsub.f32 1.5, %v532_v28 }
 0x172   :  { %v534_v32 = vmul.f32 %v607_v22, %v533_v29 }
 0x174   :  { %v538_v38 = vsel %vm537_vm15, %v607_v22, %v534_v32 }
 0x175   :  { %v539_v39 = vmul.f32 %v538_v38, %v526_v36  ;;  %v540_v35 = vmul.f32 %v538_v38, %v527_v37 }
 0x177   :  { %v541_v43 = vmul.f32 %v539_v39, %v868_v42  ;;  %v542_v34 = vmul.f32 %v540_v35, %v862_v31 }
 0x179   :  { %v543_v44 = vadd.f32 %v541_v43, %v878_v57  ;;  %v544_v45 = vadd.f32 %v542_v34, %v866_v40 }
 0x17b   :  { %v557_v49 = vrot.slane %v543_v44, 4  ;;  %v558_v47 = vrot.slane %v544_v45, 2 }
 0x17d   :  { %v565_v42 = vsel %vm560_vm8, %v557_v49, %v558_v47 }
 0x17e   :  { %v566_v31 = vsel %vm562_vm9, %v564_v50, %v565_v42 }
 0x17f   :  { %570 = vst [vmem:[#allocation10 + $0x8] sm:$0xff] %v566_v31 }
 0x180   :  { %581 = dma.vmem_to_hbm [thread:$0]  %s577_s13, 256, %s579_s16, [#allocation4]  }
 0x181   :  { %734 = dma.done.wait [#allocation4], 256  }
 0x182   :  { %735 = vsyncadd [#allocation4], 4294967040 }
 0x183   :  { %586 = vsyncpa [#allocation3], 1 }
 0x184   :  { %587 = vsyncpa [#allocation6], 1 }
 0x185   :  { %588 = vsyncpa [#allocation9], 1 }
 0x186   :  { %589 = vsyncpa [#allocation4], 1 }

</bundles_post_ra>
